<compile_context>
chip_gen: v7x
topology: tpu7x:2x2x1
jax: 0.10.0
libtpu: 0.0.40
codegen_flags: <defaults>
</compile_context>

<pallas_src>
import functools

import jax
import jax.numpy as jnp
from jax import lax
from jax.experimental import pallas as pl
from jax.experimental.pallas import tpu as pltpu


def _vmem_limits():
    """(vmem_limit_bytes, working-set budget) sized per TPU generation."""
    phys = 64 * 1024 * 1024  # conservative default = v7x per-TC VMEM
    try:
        phys = int(pltpu.get_tpu_info().vmem_capacity_bytes)
    except Exception:
        pass
    vmem_limit = min((phys * 3) // 4, 100 * 1024 * 1024)   # 48 MiB v7x, 96 MiB v5e/v6e
    budget = max(vmem_limit - 8 * 1024 * 1024, 16 * 1024 * 1024)
    return vmem_limit, budget


def _pick_tq(S, budget):
    """Query tile: multiple of 8 (sublane), divisor of S, f32 temps in budget."""
    if S <= 512:
        return S  # (S, S) f32 temps <= 2 MiB, no query tiling needed
    cap = 1024 if budget >= 64 * 1024 * 1024 else 512   # v5e/v6e vs v7x
    max_rows = max(8, budget // (2 * 4 * S))            # scores + p, f32, per row
    cap = min(cap, max_rows)
    best = None
    t = 8
    while t <= min(cap, S):
        if S % t == 0:
            best = t
        t += 8
    if best is None:
        # Awkward S (no multiple-of-8 divisor under the cap): only allow the
        # full-extent tile if its temporaries actually fit; otherwise reject
        # explicitly instead of spilling / failing to lower.
        if 2 * 4 * S * S <= budget:
            return S
        raise ValueError(
            f"seq_len={S} has no VMEM-feasible query tile; pad S to a "
            f"multiple of 8 with a divisor <= {cap}")
    return best


def _pick_tb(B, S, D, TQ, itemsize, budget):
    """Batch tile: amortize per-grid-step overhead, gated by VMEM."""
    per_b = (2 * S * D * itemsize     # resident kv slab (double-buffered)
             + 2 * TQ * D * itemsize  # output tile (double-buffered)
             + 2 * TQ * S * 4         # f32 scores + p temporaries
             + TQ * D * 4)            # q-slice / f32 out temporaries
    tb = max(1, min(B, 32, budget // max(per_b, 1)))
    while B % tb != 0:
        tb -= 1
    return tb


def _autocorrelation_kernel(x_ref, o_ref, *, tq, scale, matmul_dtype):
    # x_ref: (TB, S, D) resident key/value slab (re-DMA'd only per batch block)
    kv = x_ref[...]
    q_start = pl.multiple_of(pl.program_id(1) * tq, tq)
    q = x_ref[:, pl.ds(q_start, tq), :]               # (TB, TQ, D) query tile

    op_dtype = kv.dtype if matmul_dtype is None else matmul_dtype

    # Pre-scale the q operand (TQ*D multiplies, cheaper than scaling scores).
    qs = (q * jnp.asarray(scale, dtype=q.dtype)).astype(op_dtype)
    kv_op = kv.astype(op_dtype)

    # scores[b, i, j] = sum_d qs[b, i, d] * kv[b, j, d]  -> MXU, f32 accumulate
    scores = lax.dot_general(
        qs, kv_op,
        dimension_numbers=(((2,), (2,)), ((0,), (0,))),
        preferred_element_type=jnp.float32,
    )  # (TB, TQ, S)

    # Numerically-stable softmax numerator in f32; normalization is deferred.
    m = jnp.max(scores, axis=-1, keepdims=True)
    p = jnp.exp(scores - m)
    denom = jnp.sum(p, axis=-1, keepdims=True)        # (TB, TQ, 1)

    # out_unnorm[b, i, d] = sum_j p[b, i, j] * kv[b, j, d]
    out = lax.dot_general(
        p.astype(op_dtype), kv_op,
        dimension_numbers=(((2,), (1,)), ((0,), (0,))),
        preferred_element_type=jnp.float32,
    )  # (TB, TQ, D)

    # Deferred, EXACT normalization: TQ divides + TQ*D multiplies per tile.
    o_ref[...] = (out * (1.0 / denom)).astype(o_ref.dtype)


def autocorrelation(x, d_model, *, matmul_dtype=None):
    """x: (B, S, D) float32/bfloat16 -> (B, S, D). Matches AutoCorrelation.forward.

    matmul_dtype: optional MXU operand dtype (e.g. jnp.bfloat16 on v6e/v7x for
    ~3x matmul throughput with f32 accumulation). Default: x.dtype.
    """
    B, S, D = x.shape
    assert D == d_model
    scale = float(d_model) ** (-0.5)
    itemsize = jnp.dtype(x.dtype).itemsize

    vmem_limit, budget = _vmem_limits()
    TQ = _pick_tq(S, budget)
    TB = _pick_tb(B, S, D, TQ, itemsize, budget)
    grid = (B // TB, S // TQ)

    kernel = functools.partial(
        _autocorrelation_kernel, tq=TQ, scale=scale, matmul_dtype=matmul_dtype)

    return pl.pallas_call(
        kernel,
        out_shape=jax.ShapeDtypeStruct((B, S, D), x.dtype),
        grid_spec=pltpu.PrefetchScalarGridSpec(
            num_scalar_prefetch=0,
            grid=grid,
            in_specs=[
                # Single input: the full (TB, S, D) slab. Its index_map ignores
                # the query-tile axis, so Pallas re-DMAs it only when the batch
                # block changes; the q tile is sliced from it in-kernel.
                pl.BlockSpec((TB, S, D), lambda b, t: (b, 0, 0)),
            ],
            out_specs=pl.BlockSpec((TB, TQ, D), lambda b, t: (b, t, 0)),
        ),
        compiler_params=pltpu.CompilerParams(
            dimension_semantics=("parallel", "parallel"),
            vmem_limit_bytes=vmem_limit,
        ),
    )(x)


def autocorrelation_ref(x, d_model):
    scale = float(d_model) ** (-0.5)
    scores = jnp.einsum("bsd,btd->bst", x, x) * scale
    attn = jax.nn.softmax(scores, axis=-1)
    return jnp.einsum("bst,btd->bsd", attn, x)


if __name__ == "__main__":
    # Small shapes consistent with the module: batch=2, seq=8, d_model=32.
    B, S, D = 2, 8, 32
    nhead = 4  # unused in forward, kept for interface parity

    key = jax.random.PRNGKey(0)
    x = jax.random.normal(key, (B, S, D), dtype=jnp.float32)

    out = jax.block_until_ready(autocorrelation(x, d_model=D))
    ref = autocorrelation_ref(x, d_model=D)

    assert out.shape == (B, S, D)
    assert jnp.allclose(out, ref, atol=1e-3, rtol=1e-3), "mismatch vs reference"

    print("KERNEL_OK")
</pallas_src>

<mosaic_0001>
module attributes {stable_mosaic.version = 11 : i64} {
  func.func @_autocorrelation_kernel(%arg0: i32, %arg1: i32, %arg2: memref<2x8x32xf32, #tpu.memory_space<vmem>>, %arg3: memref<2x8x32xf32, #tpu.memory_space<vmem>>) attributes {dimension_semantics = [#tpu.dimension_semantics<parallel>, #tpu.dimension_semantics<parallel>], iteration_bounds = array<i64: 1, 1>, scalar_prefetch = 0 : i64, scratch_operands = 0 : i64, tpu.core_type = #tpu.core_type<tc>, window_params = [{transform_indices = @transform_0, window_bounds = array<i64: 2, 8, 32>}, {transform_indices = @transform_1, window_bounds = array<i64: 2, 8, 32>}]} {
    %c0 = arith.constant 0 : index
    %c0_0 = arith.constant 0 : index
    %c0_1 = arith.constant 0 : index
    %0 = vector.load %arg2[%c0, %c0_0, %c0_1] : memref<2x8x32xf32, #tpu.memory_space<vmem>>, vector<2x8x32xf32>
    %c8_i32 = arith.constant 8 : i32
    %1 = arith.muli %arg1, %c8_i32 : i32
    %2 = tpu.assume_multiple %1, 8 : i32
    %c0_2 = arith.constant 0 : index
    %3 = arith.index_cast %2 : i32 to index
    %c0_3 = arith.constant 0 : index
    %4 = vector.load %arg2[%c0_2, %3, %c0_3] : memref<2x8x32xf32, #tpu.memory_space<vmem>>, vector<2x8x32xf32>
    %cst = arith.constant 0.176776692 : f32
    %5 = vector.broadcast %cst : f32 to vector<2x8x32xf32>
    %6 = arith.mulf %4, %5 : vector<2x8x32xf32>
    %cst_4 = arith.constant dense<0.000000e+00> : vector<2x8x8xf32>
    %7 = tpu.matmul %6, %0, %cst_4 {dimension_numbers = #tpu.dot_dimension_numbers<[2], [2], [1], [1], [0, 0, 0, 1, 1, 1], [0], [0]>} : vector<2x8x32xf32>, vector<2x8x32xf32>, vector<2x8x8xf32> -> vector<2x8x8xf32>
    %cst_5 = arith.constant dense<0xFF800000> : vector<2x8xf32>
    %8 = vector.multi_reduction <maximumf>, %7, %cst_5 [2] : vector<2x8x8xf32> to vector<2x8xf32>
    %9 = vector.shape_cast %8 : vector<2x8xf32> to vector<2x8x1xf32>
    %10 = vector.broadcast %9 : vector<2x8x1xf32> to vector<2x8x8xf32>
    %11 = arith.subf %7, %10 : vector<2x8x8xf32>
    %12 = math.exp %11 : vector<2x8x8xf32>
    %cst_6 = arith.constant dense<0.000000e+00> : vector<2x8xf32>
    %13 = vector.multi_reduction <add>, %12, %cst_6 [2] : vector<2x8x8xf32> to vector<2x8xf32>
    %14 = vector.shape_cast %13 : vector<2x8xf32> to vector<2x8x1xf32>
    %cst_7 = arith.constant dense<0.000000e+00> : vector<2x8x32xf32>
    %15 = tpu.matmul %12, %0, %cst_7 {dimension_numbers = #tpu.dot_dimension_numbers<[2], [1], [1], [2], [0, 0, 0, 1, 1, 2], [0], [0]>} : vector<2x8x8xf32>, vector<2x8x32xf32>, vector<2x8x32xf32> -> vector<2x8x32xf32>
    %cst_8 = arith.constant 1.000000e+00 : f32
    %16 = vector.broadcast %cst_8 : f32 to vector<2x8x1xf32>
    %17 = arith.divf %16, %14 : vector<2x8x1xf32>
    %18 = vector.broadcast %17 : vector<2x8x1xf32> to vector<2x8x32xf32>
    %19 = arith.mulf %15, %18 : vector<2x8x32xf32>
    %c0_9 = arith.constant 0 : index
    %c0_10 = arith.constant 0 : index
    %c0_11 = arith.constant 0 : index
    %20 = vector.load %arg3[%c0_9, %c0_10, %c0_11] : memref<2x8x32xf32, #tpu.memory_space<vmem>>, vector<2x8x32xf32>
    tpu.vector_store %arg3[%c0_9, %c0_10, %c0_11], %19 {strides = array<i32>} : memref<2x8x32xf32, #tpu.memory_space<vmem>>, vector<2x8x32xf32>,
    return
  }
  func.func @transform_0(%arg0: i32, %arg1: i32) -> (i32, i32, i32) {
    %c0_i32 = arith.constant 0 : i32
    %c0_i32_0 = arith.constant 0 : i32
    %c0_i32_1 = arith.constant 0 : i32
    return %arg0, %c0_i32, %c0_i32_0 : i32, i32, i32
  }
  func.func @transform_1(%arg0: i32, %arg1: i32) -> (i32, i32, i32) {
    %c0_i32 = arith.constant 0 : i32
    %c0_i32_0 = arith.constant 0 : i32
    return %arg0, %arg1, %c0_i32 : i32, i32, i32
  }
}

</mosaic_0001>

<bundles_post_ra>
// kernel: tpu_custom_call.1
= control target key start
LH: loop header
LB: loop body
LE: loop exit
PB: predicated region body
PF: predicated region fallthrough
CT: control target
= control target key end

     0   :  { %6 = vsyncpa [#allocation3], 0  ;;  %s532_s0 = inlined_call_operand.hbm [shape: f32[2,8,32], index: 0, kind: input, shape index: {}]   ;;  %s533_s1 = inlined_call_operand.hbm [shape: f32[2,8,32], index: 1, kind: output, shape index: {}]  }
   0x1   :  { %7 = vsyncpa [#allocation4], 0  ;;  %s470_s6 = smov [#allocation2]   ;;  %s422_s10 = scalar_lea.hbm %s532_s0, 256 }
   0x2   :  { %s13_s7 = sshll.u32 %s470_s6, 4  ;;  %p423_p0 = scmp.ne.s32.totalorder %s532_s0, %s422_s10  ;;  %s14_s7 = int_to_ptr.vmem [resolvable:$true] %s13_s7 }
   0x3   :  { %p426_p1 = scmp.lt.u32.totalorder %s422_s10, %s532_s0 }
   0x5   :  { %p428_p2 = pnand %p426_p1, %p423_p0 }
   0x7   :  { %431 = shalt.err (!%p428_p2)
}
   0x8   :  { %s432_s15 = scalar_lea.vmem %s14_s7, 256  ;;  %p437_p4 = scmp.lt.s32.totalorder %s14_s7, %s14_s7 }
   0x9   :  { %p433_p3 = scmp.ne.s32.totalorder %s14_s7, %s432_s15  ;;  %p438_p5 = scmp.lt.s32.totalorder %s432_s15, %s432_s15 }
   0xb   :  { %p439_p6 = por %p438_p5, %p437_p4 }
   0xd   :  { %p440_p7 = pnand %p439_p6, %p433_p3 }
   0xf   :  { %443 = shalt.err (!%p440_p7)
}
  0x10   :  { %s471_s16 = smov 128   ;;  %s472_s17 = smov 8  }
  0x11   :  { %19 = dma.hbm_to_vmem [thread:$0]  %s532_s0, 256, %s14_s7, [#allocation3], %s471_s16, %s471_s16, %s472_s17  }
  0x12   :  { %466 = dma.done.wait [#allocation3], 256  }
  0x13   :  { %467 = vsyncadd [#allocation3], 4294967040  ;;  %v473_v0 = vmov 0.0   ;;  %vm474_vm0 = vmmov 0   ;;  %vm31_vm1 = vcmask 261120   ;;  %v23_v1 = vld [vmem:[#allocation2] sm:$0xff] }
  0x14   :  { %388 = vmatprep.subr.mxu0 %v473_v0  ;;  %390 = vmatprep.mubr.msk.f32.mxu0 %vm474_vm0, %v473_v0  ;;  %v24_v2 = vld [vmem:[#allocation2 + $0x8] sm:$0xff]  ;;  %v29_v3 = vmul.f32 0.17677669, %v23_v1  ;;  %vm184_vm2 = vcmask 64512   ;;  %s475_s0 = smov [#allocation5]  }
  0x15   :  { %393 = vmatprep.subr.mxu1 %v473_v0  ;;  %395 = vmatprep.mubr.msk.f32.mxu1 %vm474_vm0, %v473_v0  ;;  %v30_v4 = vmul.f32 0.17677669, %v24_v2  ;;  %s362_s20 = sshll.u32 %s475_s0, 4  ;;  %s363_s20 = int_to_ptr.vmem [resolvable:$true] %s362_s20 }
  0x16   :  { %389 = vmatpush3.xpose.msk.msra.mxu0 %vm31_vm1, %v23_v1  ;;  %394 = vmatpush3.xpose.msk.msra.mxu1 %vm31_vm1, %v24_v2  ;;  %s444_s21 = scalar_lea.vmem %s363_s20, 256  ;;  %p449_p9 = scmp.lt.s32.totalorder %s363_s20, %s363_s20 }
  0x17   :  { %398 = vmatprep.subr.mxu0 %v473_v0  ;;  %403 = vmatprep.subr.mxu1 %v473_v0  ;;  %p445_p8 = scmp.ne.s32.totalorder %s363_s20, %s444_s21  ;;  %p450_p10 = scmp.lt.s32.totalorder %s444_s21, %s444_s21 }
  0x19   :  { %391 = vmatmul.mubr.msk.f32.vlgmr.msra.gmra.mrb[0].mxu0 %vm31_vm1, %v29_v3  ;;  %396 = vmatmul.mubr.msk.f32.vlgmr.msra.gmra.mrb[0].mxu1 %vm31_vm1, %v30_v4  ;;  %p451_p11 = por %p450_p10, %p449_p9 }
  0x1a   :  { %399 = vmatpush3.msra.mxu0 %v23_v1  ;;  %400 = vmatprep.mubr.msk.f32.mxu0 %vm474_vm0, %v473_v0 }
  0x1b   :  { %404 = vmatpush3.msra.mxu1 %v24_v2  ;;  %405 = vmatprep.mubr.msk.f32.mxu1 %vm474_vm0, %v473_v0  ;;  %p452_p12 = pnand %p451_p11, %p445_p8 }
  0xec   :  { %v104_v5 = vpop.f32.mrb[0].mxu0  ;;  %v180_v6 = vpop.f32.mrb[0].mxu1 }
  0xed   :  { %v392_v7 = vpop.f32.mrb[1].mxu0  ;;  %v185_v8 = vsel %vm184_vm2, %v104_v5, -inf  ;;  %v397_v9 = vpop.f32.mrb[1].mxu1  ;;  %v188_v10 = vsel %vm184_vm2, %v180_v6, -inf }
  0xee   :  { %186 = vmax.xlane.f32.xlu0 %v185_v8 }
  0xf2   :  { %189 = vmax.xlane.f32.xlu0 %v188_v10 }
 0x17b   :  { %v187_v11 = vpop.xlane.xlu0 %186 }
 0x17c   :  { %v191_v12 = vsub.f32 %v104_v5, %v187_v11 }
 0x17e   :  { %v193_v13 = vmul.f32 1.442695, %v191_v12 }
 0x17f   :  { %v190_v14 = vpop.xlane.xlu0 %189 }
 0x180   :  { %414 = vpow2.f32 %v193_v13  ;;  %v192_v15 = vsub.f32 %v180_v6, %v190_v14 }
 0x182   :  { %v195_v16 = vmul.f32 1.442695, %v192_v15 }
 0x184   :  { %416 = vpow2.f32 %v195_v16 }
 0x18a   :  { %v415_v17 = vpop.eup %414 }
 0x18b   :  { %401 = vmatmul.mubr.msk.f32.vlgmr.msra.gmra.mrb[2].mxu0 %vm184_vm2, %v415_v17  ;;  %v197_v18 = vsel %vm184_vm2, %v415_v17, 0.0 }
 0x18c   :  { %198 = vadd.xlane.f32.xlu1 %v197_v18 }
 0x18e   :  { %v417_v19 = vpop.eup %416 }
 0x18f   :  { %406 = vmatmul.mubr.msk.f32.vlgmr.msra.gmra.mrb[2].mxu1 %vm184_vm2, %v417_v19  ;;  %v200_v20 = vsel %vm184_vm2, %v417_v19, 0.0 }
 0x190   :  { %201 = vadd.xlane.f32.xlu1 %v200_v20 }
 0x219   :  { %v199_v21 = vpop.xlane.xlu1 %198 }
 0x21a   :  { %418 = vrcp.f32 %v199_v21 }
 0x21d   :  { %v202_v22 = vpop.xlane.xlu1 %201 }
 0x21e   :  { %420 = vrcp.f32 %v202_v22 }
 0x224   :  { %v419_v23 = vpop.eup %418 }
 0x228   :  { %v421_v27 = vpop.eup %420 }
 0x25e   :  { %v272_v24 = vpop.f32.mrb[2].mxu0 }
 0x25f   :  { %v353_v25 = vmul.f32 %v419_v23, %v272_v24  ;;  %v402_v26 = vpop.f32.mrb[3].mxu0 }
 0x261   :  { %355 = vst.msk [vmem:[#allocation5] sm:$0xff] %vm31_vm1, %v353_v25 }
 0x262   :  { %v345_v28 = vpop.f32.mrb[2].mxu1 }
 0x263   :  { %v354_v29 = vmul.f32 %v421_v27, %v345_v28  ;;  %v407_v30 = vpop.f32.mrb[3].mxu1 }
 0x265   :  { %356 = vst.msk [vmem:[#allocation5 + $0x8] sm:$0xff] %vm31_vm1, %v354_v29 }
 0x266   :  { %455 = shalt.err (!%p452_p12)
}
 0x267   :  { %s456_s24 = scalar_lea.hbm %s533_s1, 256 }
 0x268   :  { %p457_p13 = scmp.ne.s32.totalorder %s533_s1, %s456_s24  ;;  %p460_p0 = scmp.lt.u32.totalorder %s456_s24, %s533_s1 }
 0x26a   :  { %p462_p1 = pnand %p460_p0, %p457_p13 }
 0x26c   :  { %465 = shalt.err (!%p462_p1)
}
 0x26d   :  { %368 = dma.vmem_to_hbm [thread:$0]  %s363_s20, 256, %s533_s1, [#allocation4], %s471_s16, %s471_s16, %s472_s17  }
 0x26e   :  { %468 = dma.done.wait [#allocation4], 256  }
 0x26f   :  { %469 = vsyncadd [#allocation4], 4294967040 }
 0x270   :  { %372 = vsyncpa [#allocation3], 1 }
 0x271   :  { %373 = vsyncpa [#allocation4], 1 }

</bundles_post_ra>
